<compile_context>
chip_gen: v6e
topology: v6e:2x2x1
jax: 0.10.0
libtpu: 0.0.40
codegen_flags: <defaults>
</compile_context>

<pallas_src>
import jax
import jax.numpy as jnp
from jax.experimental import pallas as pl
from jax.experimental.pallas import tpu as pltpu


# ---------------------------------------------------------------------------
# Pallas kernel: per-sample  4x (Cout,K)@(K,HW) matmul -> fused instance-norm
# stats -> normalize + ReLU, with lane-dense channel-major stores.
# ---------------------------------------------------------------------------
def _dual_unet_up_kernel(patch_ref, w_ref, out_ref):
    # patch_ref: (1, 4, K, HW)   bf16  phase-decomposed 2x2 input windows
    # w_ref:     (4, Cout, K)    bf16  per-parity flattened weights
    # out_ref:   (1, Cout, 4*HW) f32   parity-blocked, channel-major (lane = HW)
    n_par = patch_ref.shape[1]          # 4 output parities
    hw = patch_ref.shape[3]             # H*W input spatial positions
    cout = out_ref.shape[1]

    ssum = jnp.zeros((cout, 1), jnp.float32)
    ssq = jnp.zeros((cout, 1), jnp.float32)

    # One MXU matmul per parity; result lanes are the spatial axis (dense).
    for p in range(n_par):              # static, unrolled
        y = jnp.dot(w_ref[p], patch_ref[0, p],
                    preferred_element_type=jnp.float32)      # (Cout, HW) f32
        ssum = ssum + jnp.sum(y, axis=1, keepdims=True)
        ssq = ssq + jnp.sum(y * y, axis=1, keepdims=True)
        # Stash the unnormalized result in the (VMEM-resident) output block.
        out_ref[0, :, p * hw:(p + 1) * hw] = y

    # InstanceNorm2d(affine=False, eps=1e-5, biased variance), one-pass stats.
    inv_n = 1.0 / float(n_par * hw)
    mean = ssum * inv_n
    var = jnp.maximum(ssq * inv_n - mean * mean, 0.0)
    scale = jax.lax.rsqrt(var + 1e-5)

    # Normalize + ReLU, re-reading from the output block (pure VMEM traffic).
    for p in range(n_par):
        y = out_ref[0, :, p * hw:(p + 1) * hw]
        out_ref[0, :, p * hw:(p + 1) * hw] = jnp.maximum((y - mean) * scale, 0.0)


# ---------------------------------------------------------------------------
# Glue: phase-decomposed patches / weights for ConvTranspose2d(k=4, s=2, p=1)
# ---------------------------------------------------------------------------
# For output position (2a+ph, 2b+pw):
#   ph=0 uses input rows {a-1 (kh=3), a (kh=1)};  ph=1 uses {a (kh=2), a+1 (kh=0)}
# and identically for the width. With x padded by 1, the (offset, tap) pairs are:
_TAPS = {0: ((0, 3), (1, 1)),     # parity 0: (offset into padded x, kernel index)
         1: ((1, 2), (2, 0))}     # parity 1


def _phase_patches_and_weights(x, weight):
    """x: (N,Cin,H,W), weight: (Cin,Cout,4,4) ->
       patches (N, 4, 4*Cin, H*W) bf16, wmats (4, Cout, 4*Cin) bf16."""
    n, cin, h, w = x.shape
    cout = weight.shape[1]
    xp = jnp.pad(x, ((0, 0), (0, 0), (1, 1), (1, 1)))        # zero boundary

    patches, wmats = [], []
    for ph in (0, 1):
        for pw in (0, 1):
            blocks, wrows = [], []
            for (oh_off, kh) in _TAPS[ph]:
                for (ow_off, kw) in _TAPS[pw]:
                    blocks.append(xp[:, :, oh_off:oh_off + h, ow_off:ow_off + w])
                    wrows.append(weight[:, :, kh, kw])        # (Cin, Cout)
            p = jnp.stack(blocks, axis=1)                     # (N,4,Cin,H,W)
            patches.append(p.reshape(n, 4 * cin, h * w))
            wm = jnp.stack(wrows, axis=0)                     # (4,Cin,Cout)
            wmats.append(jnp.transpose(wm, (2, 0, 1)).reshape(cout, 4 * cin))

    patches = jnp.stack(patches, axis=1).astype(jnp.bfloat16)  # (N,4,4Cin,HW)
    wmats = jnp.stack(wmats, axis=0).astype(jnp.bfloat16)      # (4,Cout,4Cin)
    return patches, wmats


@jax.jit
def dual_unet_up(x, weight, skip1, skip2):
    """x: (N, Cin, H, W); weight: (Cin, Cout, 4, 4);
    skip1/skip2: (N, Cs, 2H, 2W). Returns (N, Cout+Cs1+Cs2, 2H, 2W)."""
    n, cin, h, w = x.shape
    cout = weight.shape[1]
    hw = h * w
    k4 = 4 * cin

    patches, wmats = _phase_patches_and_weights(x, weight)

    # TODO(synk): for very large Cin*H*W (e.g. deep UNet layers on v7x's 64 MiB
    # VMEM), tile the HW axis with a second grid dim + two-phase partial-sum
    # instance norm; whole-sample blocks are fine at these sizes.
    y_blk = pl.pallas_call(
        _dual_unet_up_kernel,
        out_shape=jax.ShapeDtypeStruct((n, cout, 4 * hw), jnp.float32),
        grid_spec=pltpu.PrefetchScalarGridSpec(
            num_scalar_prefetch=0,
            grid=(n,),
            in_specs=[
                pl.BlockSpec((1, 4, k4, hw), lambda i: (i, 0, 0, 0)),
                pl.BlockSpec((4, cout, k4), lambda i: (0, 0, 0)),
            ],
            out_specs=pl.BlockSpec((1, cout, 4 * hw), lambda i: (i, 0, 0)),
        ),
        compiler_params=pltpu.CompilerParams(
            dimension_semantics=("parallel",)),
    )(patches, wmats)

    # Un-block the 4 parities into the true spatial grid (small: Cout channels
    # only), then concat with the untouched skips along channels.
    y = y_blk.reshape(n, cout, 2, 2, h, w)                    # [n,c,ph,pw,a,b]
    y = jnp.transpose(y, (0, 1, 4, 2, 5, 3)).reshape(n, cout, 2 * h, 2 * w)
    return jnp.concatenate([y, skip1, skip2], axis=1)


# ---------------------------------------------------------------------------
# Pure-JAX reference (mirrors the PyTorch module) for the correctness check
# ---------------------------------------------------------------------------
def _reference(x, weight, skip1, skip2):
    w_conv = jnp.transpose(weight[:, :, ::-1, ::-1], (1, 0, 2, 3))  # (Cout,Cin,4,4)
    y = jax.lax.conv_general_dilated(
        x, w_conv, window_strides=(1, 1), padding=((2, 2), (2, 2)),
        lhs_dilation=(2, 2),
        dimension_numbers=("NCHW", "OIHW", "NCHW"),
        precision=jax.lax.Precision.HIGHEST)
    mean = y.mean(axis=(2, 3), keepdims=True)
    var = ((y - mean) ** 2).mean(axis=(2, 3), keepdims=True)
    y = (y - mean) / jnp.sqrt(var + 1e-5)
    y = jnp.maximum(y, 0.0)
    return jnp.concatenate([y, skip1, skip2], axis=1)


if __name__ == "__main__":
    # Small shapes consistent with the module: x upsampled 16x16 -> 32x32,
    # two skips with out_size channels each.
    # TODO(synk): dropout>0 branch omitted (module default dropout=0.0; at
    # eval time Dropout is identity anyway).
    N, CIN, COUT, H, W = 2, 8, 4, 16, 16
    key = jax.random.PRNGKey(0)
    kx, kw, k1, k2 = jax.random.split(key, 4)

    x = jax.random.normal(kx, (N, CIN, H, W), dtype=jnp.float32)
    weight = jax.random.normal(kw, (CIN, COUT, 4, 4), dtype=jnp.float32) * 0.1
    skip1 = jax.random.normal(k1, (N, COUT, 2 * H, 2 * W), dtype=jnp.float32)
    skip2 = jax.random.normal(k2, (N, COUT, 2 * H, 2 * W), dtype=jnp.float32)

    out = dual_unet_up(x, weight, skip1, skip2)
    out = jax.block_until_ready(out)

    ref = _reference(x, weight, skip1, skip2)
    assert out.shape == (N, COUT + COUT + COUT, 2 * H, 2 * W), out.shape
    # bf16 matmul inputs (f32 accumulation) -> slightly looser tolerance than
    # the pure-f32 reference.
    assert jnp.allclose(out, ref, atol=2e-2, rtol=2e-2), (
        float(jnp.max(jnp.abs(out - ref))))

    print("KERNEL_OK")
</pallas_src>

<mosaic_0001>
module attributes {stable_mosaic.version = 11 : i64} {
  func.func @_dual_unet_up_kernel(%arg0: i32, %arg1: memref<1x4x32x256xbf16, #tpu.memory_space<vmem>>, %arg2: memref<4x4x32xbf16, #tpu.memory_space<vmem>>, %arg3: memref<1x4x1024xf32, #tpu.memory_space<vmem>>) attributes {dimension_semantics = [#tpu.dimension_semantics<parallel>], iteration_bounds = array<i64: 2>, scalar_prefetch = 0 : i64, scratch_operands = 0 : i64, tpu.core_type = #tpu.core_type<tc>, window_params = [{transform_indices = @transform_0, window_bounds = array<i64: 1, 4, 32, 256>}, {pipeline_mode = #tpu.pipeline_mode<synchronous>, transform_indices = @transform_1, window_bounds = array<i64: 4, 4, 32>}, {transform_indices = @transform_2, window_bounds = array<i64: 1, 4, 1024>}]} {
    %cst = arith.constant 0.000000e+00 : f32
    %0 = vector.broadcast %cst : f32 to vector<4x1xf32>
    %cst_0 = arith.constant 0.000000e+00 : f32
    %1 = vector.broadcast %cst_0 : f32 to vector<4x1xf32>
    %c0 = arith.constant 0 : index
    %c0_1 = arith.constant 0 : index
    %c0_2 = arith.constant 0 : index
    %2 = vector.load %arg2[%c0, %c0_1, %c0_2] : memref<4x4x32xbf16, #tpu.memory_space<vmem>>, vector<1x4x32xbf16>
    %3 = vector.shape_cast %2 : vector<1x4x32xbf16> to vector<4x32xbf16>
    %c0_3 = arith.constant 0 : index
    %c0_4 = arith.constant 0 : index
    %c0_5 = arith.constant 0 : index
    %c0_6 = arith.constant 0 : index
    %4 = vector.load %arg1[%c0_3, %c0_4, %c0_5, %c0_6] : memref<1x4x32x256xbf16, #tpu.memory_space<vmem>>, vector<1x1x32x256xbf16>
    %5 = vector.shape_cast %4 : vector<1x1x32x256xbf16> to vector<32x256xbf16>
    %cst_7 = arith.constant dense<0.000000e+00> : vector<4x256xf32>
    %6 = tpu.matmul %3, %5, %cst_7 {dimension_numbers = #tpu.dot_dimension_numbers<[1], [0], [0], [1], [0, 0, 1, 1], [], []>} : vector<4x32xbf16>, vector<32x256xbf16>, vector<4x256xf32> -> vector<4x256xf32>
    %cst_8 = arith.constant dense<0.000000e+00> : vector<4xf32>
    %7 = vector.multi_reduction <add>, %6, %cst_8 [1] : vector<4x256xf32> to vector<4xf32>
    %8 = vector.shape_cast %7 : vector<4xf32> to vector<4x1xf32>
    %9 = arith.addf %0, %8 : vector<4x1xf32>
    %10 = arith.mulf %6, %6 : vector<4x256xf32>
    %cst_9 = arith.constant dense<0.000000e+00> : vector<4xf32>
    %11 = vector.multi_reduction <add>, %10, %cst_9 [1] : vector<4x256xf32> to vector<4xf32>
    %12 = vector.shape_cast %11 : vector<4xf32> to vector<4x1xf32>
    %13 = arith.addf %1, %12 : vector<4x1xf32>
    %c0_10 = arith.constant 0 : index
    %c0_11 = arith.constant 0 : index
    %c0_12 = arith.constant 0 : index
    %14 = vector.load %arg3[%c0_10, %c0_11, %c0_12] : memref<1x4x1024xf32, #tpu.memory_space<vmem>>, vector<1x4x256xf32>
    %15 = vector.shape_cast %14 : vector<1x4x256xf32> to vector<4x256xf32>
    %16 = vector.shape_cast %6 : vector<4x256xf32> to vector<1x4x256xf32>
    tpu.vector_store %arg3[%c0_10, %c0_11, %c0_12], %16 {strides = array<i32>} : memref<1x4x1024xf32, #tpu.memory_space<vmem>>, vector<1x4x256xf32>,
    %c1 = arith.constant 1 : index
    %c0_13 = arith.constant 0 : index
    %c0_14 = arith.constant 0 : index
    %17 = vector.load %arg2[%c1, %c0_13, %c0_14] : memref<4x4x32xbf16, #tpu.memory_space<vmem>>, vector<1x4x32xbf16>
    %18 = vector.shape_cast %17 : vector<1x4x32xbf16> to vector<4x32xbf16>
    %c0_15 = arith.constant 0 : index
    %c1_16 = arith.constant 1 : index
    %c0_17 = arith.constant 0 : index
    %c0_18 = arith.constant 0 : index
    %19 = vector.load %arg1[%c0_15, %c1_16, %c0_17, %c0_18] : memref<1x4x32x256xbf16, #tpu.memory_space<vmem>>, vector<1x1x32x256xbf16>
    %20 = vector.shape_cast %19 : vector<1x1x32x256xbf16> to vector<32x256xbf16>
    %cst_19 = arith.constant dense<0.000000e+00> : vector<4x256xf32>
    %21 = tpu.matmul %18, %20, %cst_19 {dimension_numbers = #tpu.dot_dimension_numbers<[1], [0], [0], [1], [0, 0, 1, 1], [], []>} : vector<4x32xbf16>, vector<32x256xbf16>, vector<4x256xf32> -> vector<4x256xf32>
    %cst_20 = arith.constant dense<0.000000e+00> : vector<4xf32>
    %22 = vector.multi_reduction <add>, %21, %cst_20 [1] : vector<4x256xf32> to vector<4xf32>
    %23 = vector.shape_cast %22 : vector<4xf32> to vector<4x1xf32>
    %24 = arith.addf %9, %23 : vector<4x1xf32>
    %25 = arith.mulf %21, %21 : vector<4x256xf32>
    %cst_21 = arith.constant dense<0.000000e+00> : vector<4xf32>
    %26 = vector.multi_reduction <add>, %25, %cst_21 [1] : vector<4x256xf32> to vector<4xf32>
    %27 = vector.shape_cast %26 : vector<4xf32> to vector<4x1xf32>
    %28 = arith.addf %13, %27 : vector<4x1xf32>
    %c0_22 = arith.constant 0 : index
    %c0_23 = arith.constant 0 : index
    %c256 = arith.constant 256 : index
    %29 = vector.load %arg3[%c0_22, %c0_23, %c256] : memref<1x4x1024xf32, #tpu.memory_space<vmem>>, vector<1x4x256xf32>
    %30 = vector.shape_cast %29 : vector<1x4x256xf32> to vector<4x256xf32>
    %31 = vector.shape_cast %21 : vector<4x256xf32> to vector<1x4x256xf32>
    tpu.vector_store %arg3[%c0_22, %c0_23, %c256], %31 {strides = array<i32>} : memref<1x4x1024xf32, #tpu.memory_space<vmem>>, vector<1x4x256xf32>,
    %c2 = arith.constant 2 : index
    %c0_24 = arith.constant 0 : index
    %c0_25 = arith.constant 0 : index
    %32 = vector.load %arg2[%c2, %c0_24, %c0_25] : memref<4x4x32xbf16, #tpu.memory_space<vmem>>, vector<1x4x32xbf16>
    %33 = vector.shape_cast %32 : vector<1x4x32xbf16> to vector<4x32xbf16>
    %c0_26 = arith.constant 0 : index
    %c2_27 = arith.constant 2 : index
    %c0_28 = arith.constant 0 : index
    %c0_29 = arith.constant 0 : index
    %34 = vector.load %arg1[%c0_26, %c2_27, %c0_28, %c0_29] : memref<1x4x32x256xbf16, #tpu.memory_space<vmem>>, vector<1x1x32x256xbf16>
    %35 = vector.shape_cast %34 : vector<1x1x32x256xbf16> to vector<32x256xbf16>
    %cst_30 = arith.constant dense<0.000000e+00> : vector<4x256xf32>
    %36 = tpu.matmul %33, %35, %cst_30 {dimension_numbers = #tpu.dot_dimension_numbers<[1], [0], [0], [1], [0, 0, 1, 1], [], []>} : vector<4x32xbf16>, vector<32x256xbf16>, vector<4x256xf32> -> vector<4x256xf32>
    %cst_31 = arith.constant dense<0.000000e+00> : vector<4xf32>
    %37 = vector.multi_reduction <add>, %36, %cst_31 [1] : vector<4x256xf32> to vector<4xf32>
    %38 = vector.shape_cast %37 : vector<4xf32> to vector<4x1xf32>
    %39 = arith.addf %24, %38 : vector<4x1xf32>
    %40 = arith.mulf %36, %36 : vector<4x256xf32>
    %cst_32 = arith.constant dense<0.000000e+00> : vector<4xf32>
    %41 = vector.multi_reduction <add>, %40, %cst_32 [1] : vector<4x256xf32> to vector<4xf32>
    %42 = vector.shape_cast %41 : vector<4xf32> to vector<4x1xf32>
    %43 = arith.addf %28, %42 : vector<4x1xf32>
    %c0_33 = arith.constant 0 : index
    %c0_34 = arith.constant 0 : index
    %c512 = arith.constant 512 : index
    %44 = vector.load %arg3[%c0_33, %c0_34, %c512] : memref<1x4x1024xf32, #tpu.memory_space<vmem>>, vector<1x4x256xf32>
    %45 = vector.shape_cast %44 : vector<1x4x256xf32> to vector<4x256xf32>
    %46 = vector.shape_cast %36 : vector<4x256xf32> to vector<1x4x256xf32>
    tpu.vector_store %arg3[%c0_33, %c0_34, %c512], %46 {strides = array<i32>} : memref<1x4x1024xf32, #tpu.memory_space<vmem>>, vector<1x4x256xf32>,
    %c3 = arith.constant 3 : index
    %c0_35 = arith.constant 0 : index
    %c0_36 = arith.constant 0 : index
    %47 = vector.load %arg2[%c3, %c0_35, %c0_36] : memref<4x4x32xbf16, #tpu.memory_space<vmem>>, vector<1x4x32xbf16>
    %48 = vector.shape_cast %47 : vector<1x4x32xbf16> to vector<4x32xbf16>
    %c0_37 = arith.constant 0 : index
    %c3_38 = arith.constant 3 : index
    %c0_39 = arith.constant 0 : index
    %c0_40 = arith.constant 0 : index
    %49 = vector.load %arg1[%c0_37, %c3_38, %c0_39, %c0_40] : memref<1x4x32x256xbf16, #tpu.memory_space<vmem>>, vector<1x1x32x256xbf16>
    %50 = vector.shape_cast %49 : vector<1x1x32x256xbf16> to vector<32x256xbf16>
    %cst_41 = arith.constant dense<0.000000e+00> : vector<4x256xf32>
    %51 = tpu.matmul %48, %50, %cst_41 {dimension_numbers = #tpu.dot_dimension_numbers<[1], [0], [0], [1], [0, 0, 1, 1], [], []>} : vector<4x32xbf16>, vector<32x256xbf16>, vector<4x256xf32> -> vector<4x256xf32>
    %cst_42 = arith.constant dense<0.000000e+00> : vector<4xf32>
    %52 = vector.multi_reduction <add>, %51, %cst_42 [1] : vector<4x256xf32> to vector<4xf32>
    %53 = vector.shape_cast %52 : vector<4xf32> to vector<4x1xf32>
    %54 = arith.addf %39, %53 : vector<4x1xf32>
    %55 = arith.mulf %51, %51 : vector<4x256xf32>
    %cst_43 = arith.constant dense<0.000000e+00> : vector<4xf32>
    %56 = vector.multi_reduction <add>, %55, %cst_43 [1] : vector<4x256xf32> to vector<4xf32>
    %57 = vector.shape_cast %56 : vector<4xf32> to vector<4x1xf32>
    %58 = arith.addf %43, %57 : vector<4x1xf32>
    %c0_44 = arith.constant 0 : index
    %c0_45 = arith.constant 0 : index
    %c768 = arith.constant 768 : index
    %59 = vector.load %arg3[%c0_44, %c0_45, %c768] : memref<1x4x1024xf32, #tpu.memory_space<vmem>>, vector<1x4x256xf32>
    %60 = vector.shape_cast %59 : vector<1x4x256xf32> to vector<4x256xf32>
    %61 = vector.shape_cast %51 : vector<4x256xf32> to vector<1x4x256xf32>
    tpu.vector_store %arg3[%c0_44, %c0_45, %c768], %61 {strides = array<i32>} : memref<1x4x1024xf32, #tpu.memory_space<vmem>>, vector<1x4x256xf32>,
    %cst_46 = arith.constant 9.765625E-4 : f32
    %62 = vector.broadcast %cst_46 : f32 to vector<4x1xf32>
    %63 = arith.mulf %54, %62 : vector<4x1xf32>
    %cst_47 = arith.constant 9.765625E-4 : f32
    %64 = vector.broadcast %cst_47 : f32 to vector<4x1xf32>
    %65 = arith.mulf %58, %64 : vector<4x1xf32>
    %66 = arith.mulf %63, %63 : vector<4x1xf32>
    %67 = arith.subf %65, %66 : vector<4x1xf32>
    %cst_48 = arith.constant 0.000000e+00 : f32
    %68 = vector.broadcast %cst_48 : f32 to vector<4x1xf32>
    %69 = arith.maximumf %67, %68 : vector<4x1xf32>
    %cst_49 = arith.constant 9.99999974E-6 : f32
    %70 = vector.broadcast %cst_49 : f32 to vector<4x1xf32>
    %71 = arith.addf %69, %70 : vector<4x1xf32>
    %72 = math.rsqrt %71 : vector<4x1xf32>
    %c0_50 = arith.constant 0 : index
    %c0_51 = arith.constant 0 : index
    %c0_52 = arith.constant 0 : index
    %73 = vector.load %arg3[%c0_50, %c0_51, %c0_52] : memref<1x4x1024xf32, #tpu.memory_space<vmem>>, vector<1x4x256xf32>
    %74 = vector.shape_cast %73 : vector<1x4x256xf32> to vector<4x256xf32>
    %75 = vector.broadcast %63 : vector<4x1xf32> to vector<4x256xf32>
    %76 = arith.subf %74, %75 : vector<4x256xf32>
    %77 = vector.broadcast %72 : vector<4x1xf32> to vector<4x256xf32>
    %78 = arith.mulf %76, %77 : vector<4x256xf32>
    %cst_53 = arith.constant 0.000000e+00 : f32
    %79 = vector.broadcast %cst_53 : f32 to vector<4x256xf32>
    %80 = arith.maximumf %78, %79 : vector<4x256xf32>
    %c0_54 = arith.constant 0 : index
    %c0_55 = arith.constant 0 : index
    %c0_56 = arith.constant 0 : index
    %81 = vector.load %arg3[%c0_54, %c0_55, %c0_56] : memref<1x4x1024xf32, #tpu.memory_space<vmem>>, vector<1x4x256xf32>
    %82 = vector.shape_cast %81 : vector<1x4x256xf32> to vector<4x256xf32>
    %83 = vector.shape_cast %80 : vector<4x256xf32> to vector<1x4x256xf32>
    tpu.vector_store %arg3[%c0_54, %c0_55, %c0_56], %83 {strides = array<i32>} : memref<1x4x1024xf32, #tpu.memory_space<vmem>>, vector<1x4x256xf32>,
    %c0_57 = arith.constant 0 : index
    %c0_58 = arith.constant 0 : index
    %c256_59 = arith.constant 256 : index
    %84 = vector.load %arg3[%c0_57, %c0_58, %c256_59] : memref<1x4x1024xf32, #tpu.memory_space<vmem>>, vector<1x4x256xf32>
    %85 = vector.shape_cast %84 : vector<1x4x256xf32> to vector<4x256xf32>
    %86 = vector.broadcast %63 : vector<4x1xf32> to vector<4x256xf32>
    %87 = arith.subf %85, %86 : vector<4x256xf32>
    %88 = vector.broadcast %72 : vector<4x1xf32> to vector<4x256xf32>
    %89 = arith.mulf %87, %88 : vector<4x256xf32>
    %cst_60 = arith.constant 0.000000e+00 : f32
    %90 = vector.broadcast %cst_60 : f32 to vector<4x256xf32>
    %91 = arith.maximumf %89, %90 : vector<4x256xf32>
    %c0_61 = arith.constant 0 : index
    %c0_62 = arith.constant 0 : index
    %c256_63 = arith.constant 256 : index
    %92 = vector.load %arg3[%c0_61, %c0_62, %c256_63] : memref<1x4x1024xf32, #tpu.memory_space<vmem>>, vector<1x4x256xf32>
    %93 = vector.shape_cast %92 : vector<1x4x256xf32> to vector<4x256xf32>
    %94 = vector.shape_cast %91 : vector<4x256xf32> to vector<1x4x256xf32>
    tpu.vector_store %arg3[%c0_61, %c0_62, %c256_63], %94 {strides = array<i32>} : memref<1x4x1024xf32, #tpu.memory_space<vmem>>, vector<1x4x256xf32>,
    %c0_64 = arith.constant 0 : index
    %c0_65 = arith.constant 0 : index
    %c512_66 = arith.constant 512 : index
    %95 = vector.load %arg3[%c0_64, %c0_65, %c512_66] : memref<1x4x1024xf32, #tpu.memory_space<vmem>>, vector<1x4x256xf32>
    %96 = vector.shape_cast %95 : vector<1x4x256xf32> to vector<4x256xf32>
    %97 = vector.broadcast %63 : vector<4x1xf32> to vector<4x256xf32>
    %98 = arith.subf %96, %97 : vector<4x256xf32>
    %99 = vector.broadcast %72 : vector<4x1xf32> to vector<4x256xf32>
    %100 = arith.mulf %98, %99 : vector<4x256xf32>
    %cst_67 = arith.constant 0.000000e+00 : f32
    %101 = vector.broadcast %cst_67 : f32 to vector<4x256xf32>
    %102 = arith.maximumf %100, %101 : vector<4x256xf32>
    %c0_68 = arith.constant 0 : index
    %c0_69 = arith.constant 0 : index
    %c512_70 = arith.constant 512 : index
    %103 = vector.load %arg3[%c0_68, %c0_69, %c512_70] : memref<1x4x1024xf32, #tpu.memory_space<vmem>>, vector<1x4x256xf32>
    %104 = vector.shape_cast %103 : vector<1x4x256xf32> to vector<4x256xf32>
    %105 = vector.shape_cast %102 : vector<4x256xf32> to vector<1x4x256xf32>
    tpu.vector_store %arg3[%c0_68, %c0_69, %c512_70], %105 {strides = array<i32>} : memref<1x4x1024xf32, #tpu.memory_space<vmem>>, vector<1x4x256xf32>,
    %c0_71 = arith.constant 0 : index
    %c0_72 = arith.constant 0 : index
    %c768_73 = arith.constant 768 : index
    %106 = vector.load %arg3[%c0_71, %c0_72, %c768_73] : memref<1x4x1024xf32, #tpu.memory_space<vmem>>, vector<1x4x256xf32>
    %107 = vector.shape_cast %106 : vector<1x4x256xf32> to vector<4x256xf32>
    %108 = vector.broadcast %63 : vector<4x1xf32> to vector<4x256xf32>
    %109 = arith.subf %107, %108 : vector<4x256xf32>
    %110 = vector.broadcast %72 : vector<4x1xf32> to vector<4x256xf32>
    %111 = arith.mulf %109, %110 : vector<4x256xf32>
    %cst_74 = arith.constant 0.000000e+00 : f32
    %112 = vector.broadcast %cst_74 : f32 to vector<4x256xf32>
    %113 = arith.maximumf %111, %112 : vector<4x256xf32>
    %c0_75 = arith.constant 0 : index
    %c0_76 = arith.constant 0 : index
    %c768_77 = arith.constant 768 : index
    %114 = vector.load %arg3[%c0_75, %c0_76, %c768_77] : memref<1x4x1024xf32, #tpu.memory_space<vmem>>, vector<1x4x256xf32>
    %115 = vector.shape_cast %114 : vector<1x4x256xf32> to vector<4x256xf32>
    %116 = vector.shape_cast %113 : vector<4x256xf32> to vector<1x4x256xf32>
    tpu.vector_store %arg3[%c0_75, %c0_76, %c768_77], %116 {strides = array<i32>} : memref<1x4x1024xf32, #tpu.memory_space<vmem>>, vector<1x4x256xf32>,
    return
  }
  func.func @transform_0(%arg0: i32) -> (i32, i32, i32, i32) {
    %c0_i32 = arith.constant 0 : i32
    %c0_i32_0 = arith.constant 0 : i32
    %c0_i32_1 = arith.constant 0 : i32
    %c0_i32_2 = arith.constant 0 : i32
    return %arg0, %c0_i32, %c0_i32_0, %c0_i32_1 : i32, i32, i32, i32
  }
  func.func @transform_1(%arg0: i32) -> (i32, i32, i32) {
    %c0_i32 = arith.constant 0 : i32
    %c0_i32_0 = arith.constant 0 : i32
    %c0_i32_1 = arith.constant 0 : i32
    %c0_i32_2 = arith.constant 0 : i32
    return %c0_i32, %c0_i32_0, %c0_i32_1 : i32, i32, i32
  }
  func.func @transform_2(%arg0: i32) -> (i32, i32, i32) {
    %c0_i32 = arith.constant 0 : i32
    %c0_i32_0 = arith.constant 0 : i32
    %c0_i32_1 = arith.constant 0 : i32
    return %arg0, %c0_i32, %c0_i32_0 : i32, i32, i32
  }
}

</mosaic_0001>

<bundles_post_ra>
// kernel: dual_unet_up.1
= control target key start
LH: loop header
LB: loop body
LE: loop exit
PB: predicated region body
PF: predicated region fallthrough
CT: control target
= control target key end

     0   :  { %s714_s9 = smov 0   ;;  %s833_s0 = inlined_call_operand.vmem [shape: bf16[2,4,32,256], index: 0, kind: input, shape index: {}]   ;;  %s834_s1 = inlined_call_operand.vmem [shape: bf16[4,4,32], index: 1, kind: input, shape index: {}]   ;;  %s835_s2 = inlined_call_operand.vmem [shape: f32[2,4,1024], index: 2, kind: output, shape index: {}]  }
   0x1 LB: > { %s605_s10 = sadd.s32 4294967295, %s695_s9   ;;  %p609_p0 = scmp.ge.s32.totalorder %s695_s9, 1  ;;  %s695_s9 = sphi %s714_s9, %s12_s9  }
   0x2   : > { %p112_p1 = scmp.lt.s32.totalorder %s695_s9, 3 }
   0x4   : > { %p113_p2 = pnand %p609_p0, %p112_p1 }
   0x5   : > { %p134_p3 = scmp.lt.s32.totalorder (!%p113_p2), %s605_s10, 1 }
   0x6   : > { %116 = sbr.rel (%p113_p2) target bundleno = 405 (0x195), region = 28 }
   0xb   : > { %v697_v0 = vmov 0   ;;  %s837_s10 = smov (!%p134_p3, %s605_s10), 1  ;;  %v145_v9 = vld [vmem:[%s834_s1] sm:$0x3]  ;;  %v619_v10 = vld [vmem:[%s834_s1 + $0x2] sm:$0x3] }
   0xc   : > { %206 = vmatprep.mubr.bf16.mxu0 %v697_v0  ;;  %297 = vmatprep.mubr.bf16.mxu1 %v697_v0  ;;  %s651_s11 = sshll.u32 %s837_s10, 7  ;;  %vm170_vm0 = vcmask 261120   ;;  %v629_v19 = vld [vmem:[%s834_s1 + $0x4] sm:$0x3]  ;;  %v639_v20 = vld [vmem:[%s834_s1 + $0x6] sm:$0x3] }
   0xd   : > { %s728_s14 = scalar_lea.vmem %s833_s0, %s651_s11  ;;  %vm215_vm1 = vcmask 1043456   ;;  %s652_s23 = sshll.u32 %s837_s10, 5 }
   0xe   : > { %v663_v1 = vld [vmem:[%s728_s14 + $0x14] ss:$8 sps:$4 sm:$0xff]   ;;  %v667_v3 = vld [vmem:[%s728_s14 + $0x10] ss:$8 sps:$4 sm:$0xff]   ;;  %v669_v5 = vld [vmem:[%s728_s14 + $0x4] ss:$8 sps:$4 sm:$0xff]   ;;  %s143_s26 = scalar_lea.vmem %s835_s2, %s652_s23 }
   0xf   : > { %v665_v2 = vld [vmem:[%s728_s14 + $0x34] ss:$8 sps:$4 sm:$0xff]   ;;  %186 = vmatprep.subr.bf16.mxu0 %v663_v1  ;;  %v668_v4 = vld [vmem:[%s728_s14 + $0x30] ss:$8 sps:$4 sm:$0xff]   ;;  %v671_v6 = vld [vmem:[%s728_s14 + $0x24] ss:$8 sps:$4 sm:$0xff]  }
  0x10   : > { %277 = vmatprep.subr.bf16.mxu1 %v665_v2  ;;  %187 = vmatpush1.bf16.msra.mxu0 %v667_v3  ;;  %v673_v7 = vld [vmem:[%s728_s14] ss:$8 sps:$4 sm:$0xff]   ;;  %v677_v11 = vld [vmem:[%s728_s14 + $0x54] ss:$8 sps:$4 sm:$0xff]   ;;  %v675_v12 = vld [vmem:[%s728_s14 + $0x50] ss:$8 sps:$4 sm:$0xff]  }
  0x11   : > { %278 = vmatpush1.bf16.msra.mxu1 %v668_v4  ;;  %188 = vmatprep.subr.bf16.mxu0 %v669_v5  ;;  %v674_v8 = vld [vmem:[%s728_s14 + $0x20] ss:$8 sps:$4 sm:$0xff]   ;;  %v680_v13 = vld [vmem:[%s728_s14 + $0x74] ss:$8 sps:$4 sm:$0xff]   ;;  %v678_v14 = vld [vmem:[%s728_s14 + $0x70] ss:$8 sps:$4 sm:$0xff]  }
  0x12   : > { %279 = vmatprep.subr.bf16.mxu1 %v671_v6  ;;  %v683_v15 = vld [vmem:[%s728_s14 + $0x44] ss:$8 sps:$4 sm:$0xff]   ;;  %v681_v17 = vld [vmem:[%s728_s14 + $0x40] ss:$8 sps:$4 sm:$0xff]  }
  0x13   : > { %v686_v16 = vld [vmem:[%s728_s14 + $0x64] ss:$8 sps:$4 sm:$0xff]   ;;  %v684_v18 = vld [vmem:[%s728_s14 + $0x60] ss:$8 sps:$4 sm:$0xff]  }
  0x14   : > { %189 = vmatpush1.bf16.msra.mxu0 %v673_v7 }
  0x15   : > { %280 = vmatpush1.bf16.msra.mxu1 %v674_v8  ;;  %367 = vmatprep.subr.bf16.mxu0 %v677_v11 }
  0x16   : > { %457 = vmatprep.subr.bf16.mxu1 %v680_v13 }
  0x17   : > { %618 = vmatmul.mubr.msk.bf16.vlgmr.msra.gmra.mxu0 %vm170_vm0, %v145_v9 }
  0x18   : > { %628 = vmatmul.mubr.msk.bf16.vlgmr.msra.gmra.mxu1 %vm170_vm0, %v619_v10  ;;  %368 = vmatpush1.bf16.msra.mxu0 %v675_v12 }
  0x19   : > { %458 = vmatpush1.bf16.msra.mxu1 %v678_v14  ;;  %369 = vmatprep.subr.bf16.mxu0 %v683_v15 }
  0x1a   : > { %459 = vmatprep.subr.bf16.mxu1 %v686_v16  ;;  %387 = vmatprep.mubr.bf16.mxu0 %v697_v0 }
  0x1b   : > { %477 = vmatprep.mubr.bf16.mxu1 %v697_v0 }
  0x1c   : > { %370 = vmatpush1.bf16.msra.mxu0 %v681_v17 }
  0x1d   : > { %460 = vmatpush1.bf16.msra.mxu1 %v684_v18 }
  0x1f   : > { %638 = vmatmul.mubr.msk.bf16.vlgmr.msra.gmra.mxu0 %vm170_vm0, %v629_v19 }
  0x20   : > { %648 = vmatmul.mubr.msk.bf16.vlgmr.msra.gmra.mxu1 %vm170_vm0, %v639_v20 }
  0xd7   : > { %v762_v21 = vpop.f32.mrf.mxu0 }
  0xd8   : > { %v764_v22 = vpop.f32.mrf.mxu1  ;;  %v222_v25 = vmul.f32 %v762_v21, %v762_v21  ;;  %v216_v28 = vsel %vm215_vm1, %v762_v21, 0.0 }
  0xd9   : > { %v766_v23 = vpop.f32.mrf.mxu0  ;;  %v312_v30 = vmul.f32 %v764_v22, %v764_v22  ;;  %v306_v36 = vsel %vm215_vm1, %v764_v22, 0.0 }
  0xda   : > { %v768_v24 = vpop.f32.mrf.mxu1  ;;  %v232_v26 = vcombine.low %v762_v21, %v766_v23  ;;  %v217_v29 = vsel %vm215_vm1, %v766_v23, 0.0  ;;  %v223_v35 = vmul.f32 %v766_v23, %v766_v23  ;;  %v224_v40 = vsel %vm215_vm1, %v222_v25, 0.0 }
  0xdb   : > { %v322_v27 = vcombine.low %v764_v22, %v768_v24  ;;  %v313_v31 = vmul.f32 %v768_v24, %v768_v24  ;;  %v212_v32 = vpop.f32.mrf.mxu0  ;;  %v218_v34 = vadd.f32 %v217_v29, %v216_v28  ;;  %v307_v37 = vsel %vm215_vm1, %v768_v24, 0.0 }
  0xdc   : > { %v303_v33 = vpop.f32.mrf.mxu1  ;;  %v225_v41 = vsel %vm215_vm1, %v223_v35, 0.0  ;;  %v308_v45 = vadd.f32 %v307_v37, %v306_v36  ;;  %v314_v46 = vsel %vm215_vm1, %v312_v30, 0.0  ;;  %v517_v36 = vlaneseq }
  0xdd   : > { %219 = vadd.xlane.f32.xlu0 %v218_v34  ;;  %v213_v39 = vpop.f32.mrf.mxu0  ;;  %v226_v42 = vadd.f32 %v225_v41, %v224_v40  ;;  %v315_v47 = vsel %vm215_vm1, %v313_v31, 0.0  ;;  %v698_v34 = vmov 839922192  }
  0xde   : > { %v304_v38 = vpop.f32.mrf.mxu1  ;;  %v316_v54 = vadd.f32 %v315_v47, %v314_v46  ;;  %v515_v35 = vunpack.c.l.s4 %v698_v34  ;;  %v518_v39 = vshrl.u32 %v517_v36, 7 }
  0xdf   : > { %v794_v44 = vpop.f32.mrf.mxu0  ;;  %227 = vadd.xlane.f32.xlu1 %v226_v42 }
  0xe0   : > { %v792_v43 = vpop.f32.mrf.mxu1  ;;  %v402_v48 = vmul.f32 %v794_v44, %v794_v44  ;;  %v396_v59 = vsel %vm215_vm1, %v794_v44, 0.0  ;;  %v516_v38 = vunpack.c.0.s8 %v515_v35 }
  0xe1   : > { %309 = vadd.xlane.f32.xlu0 %v308_v45  ;;  %v391_v50 = vpop.f32.mrf.mxu0  ;;  %v492_v55 = vmul.f32 %v792_v43, %v792_v43  ;;  %v486_v3 = vsel %vm215_vm1, %v792_v43, 0.0 }
  0xe2   : > { %v800_v49 = vpop.f32.mrf.mxu1  ;;  %v403_v52 = vmul.f32 %v391_v50, %v391_v50  ;;  %v412_v53 = vcombine.low %v794_v44, %v391_v50  ;;  %v397_v60 = vsel %vm215_vm1, %v391_v50, 0.0  ;;  %v404_v62 = vsel %vm215_vm1, %v402_v48, 0.0 }
  0xe3   : > { %v502_v51 = vcombine.low %v792_v43, %v800_v49  ;;  %v493_v56 = vmul.f32 %v800_v49, %v800_v49  ;;  %v393_v58 = vpop.f32.mrf.mxu0  ;;  %317 = vadd.xlane.f32.xlu1 %v316_v54  ;;  %v398_v61 = vadd.f32 %v397_v60, %v396_v59  ;;  %v487_v4 = vsel %vm215_vm1, %v800_v49, 0.0 }
  0xe4   : > { %v483_v57 = vpop.f32.mrf.mxu1  ;;  %v405_v63 = vsel %vm215_vm1, %v403_v52, 0.0  ;;  %v494_v5 = vsel %vm215_vm1, %v492_v55, 0.0  ;;  %v488_v7 = vadd.f32 %v487_v4, %v486_v3  ;;  %v519_v40 = vsub.s32 %v516_v38, %v518_v39 }
  0xe5   : > { %v394_v1 = vpop.f32.mrf.mxu0  ;;  %v406_v2 = vadd.f32 %v405_v63, %v404_v62  ;;  %399 = vadd.xlane.f32.xlu0 %v398_v61  ;;  %v495_v6 = vsel %vm215_vm1, %v493_v56, 0.0 }
  0xe6   : > { %v484_v0 = vpop.f32.mrf.mxu1  ;;  %v496_v8 = vadd.f32 %v495_v6, %v494_v5 }
  0xe7   : > { %407 = vadd.xlane.f32.xlu1 %v406_v2 }
  0xe9   : > { %489 = vadd.xlane.f32.xlu0 %v488_v7 }
  0xeb   : > { %497 = vadd.xlane.f32.xlu1 %v496_v8 }
 0x166   : > { %v220_v9 = vpop.xlane.xlu0 %219 }
 0x168   : > { %v228_v10 = vpop.xlane.xlu1 %227 }
 0x16a   : > { %v310_v11 = vpop.xlane.xlu0 %309 }
 0x16b   : > { %v311_v14 = vadd.f32 %v310_v11, %v220_v9 }
 0x16c   : > { %v318_v12 = vpop.xlane.xlu1 %317 }
 0x16d   : > { %v319_v16 = vadd.f32 %v318_v12, %v228_v10 }
 0x16e   : > { %v400_v13 = vpop.xlane.xlu0 %399 }
 0x16f   : > { %v401_v17 = vadd.f32 %v400_v13, %v311_v14 }
 0x170   : > { %v408_v15 = vpop.xlane.xlu1 %407 }
 0x171   : > { %v409_v19 = vadd.f32 %v408_v15, %v319_v16 }
 0x172   : > { %v490_v18 = vpop.xlane.xlu0 %489 }
 0x173   : > { %v491_v20 = vadd.f32 %v490_v18, %v401_v17 }
 0x174   : > { %v498_v25 = vpop.xlane.xlu1 %497 }
 0x175   : > { %v505_v28 = vmul.f32 0.0009765625, %v491_v20  ;;  %v499_v29 = vadd.f32 %v498_v25, %v409_v19 }
 0x177   : > { %v507_v30 = vmul.f32 %v505_v28, %v505_v28  ;;  %v506_v31 = vmul.f32 0.0009765625, %v499_v29  ;;  %v520_v41 = vrot.slane %v505_v28, %v519_v40 }
 0x179   : > { %v508_v32 = vsub.f32 %v506_v31, %v507_v30  ;;  %v522_v43 = vsub.f32 %v232_v26, %v520_v41  ;;  %v536_v44 = vsub.f32 %v322_v27, %v520_v41  ;;  %v541_v45 = vsub.f32 %v412_v53, %v520_v41 }
 0x17a   : > { %v546_v46 = vsub.f32 %v502_v51, %v520_v41 }
 0x17b   : > { %v509_v33 = vmax.f32 %v508_v32, 0.0 }
 0x17d   : > { %v510_v37 = vadd.f32 1e-05, %v509_v33 }
 0x17f   : > { %687 = vrsqrt.f32 %v510_v37 }
 0x18c   : > { %v688_v42 = vpop.eup %687 }
 0x18d   : > { %v530_v47 = vrot.slane %v688_v42, %v519_v40 }
 0x18f   : > { %v532_v48 = vmul.f32 %v530_v47, %v522_v43  ;;  %v537_v49 = vmul.f32 %v536_v44, %v530_v47  ;;  %v542_v50 = vmul.f32 %v541_v45, %v530_v47  ;;  %v547_v52 = vmul.f32 %v546_v46, %v530_v47 }
 0x191   : > { %v533_v54 = vmax.f32 %v532_v48, 0.0  ;;  %v538_v55 = vmax.f32 %v537_v49, 0.0  ;;  %v543_v21 = vmax.f32 %v542_v50, 0.0  ;;  %v548_v23 = vmax.f32 %v547_v52, 0.0 }
 0x193   : > { %534 = vst [vmem:[%s143_s26] sm:$0xff] %v533_v54  ;;  %539 = vst [vmem:[%s143_s26 + $0x8] sm:$0xff] %v538_v55 }
 0x194   : > { %544 = vst [vmem:[%s143_s26 + $0x10] sm:$0xff] %v543_v21  ;;  %549 = vst [vmem:[%s143_s26 + $0x18] sm:$0xff] %v548_v23 }
 0x195 PF: > { %s12_s9 = sadd.s32 1, %s695_s9  }
 0x196   : > { %p9_p4 = scmp.ge.s32.totalorder %s12_s9, 4  }
 0x198   :  { %11 = sbr.rel (!%p9_p4) target bundleno = 1 (0x1), region = 64 }

</bundles_post_ra>
